<compile_context>
chip_gen: v5e
topology: v5e:2x2
jax: 0.10.0
libtpu: 0.0.40
codegen_flags: <defaults>
</compile_context>

<pallas_src>
import functools
import math

import jax
import jax.numpy as jnp
import numpy as np
from jax import lax
from jax.experimental import pallas as pl
from jax.experimental.pallas import tpu as pltpu

N_VIEWS = 6
_VMEM_LIMIT = 48 * 1024 * 1024  # fits v5e/v6e (128 MiB) and v7x (64 MiB) VMEM


def _pick_row_tile(h, width, max_tokens):
    """Largest divisor t of h with (t*width) % 16 == 0 and t*width <= max_tokens."""
    best = None
    for t in range(1, h + 1):
        if h % t:
            continue
        tq = t * width
        if tq % 16:
            continue
        if tq <= max_tokens:
            best = t
    if best is None:  # fall back: smallest 16-aligned tile
        for t in range(1, h + 1):
            if h % t == 0 and (t * width) % 16 == 0:
                best = t
                break
    if best is None:
        raise ValueError(f"cannot tile H={h}, width={width} into 16-row q tiles")
    return best


# ---------------------------------------------------------------------------
# Kernel 1: fused QKV projection, re-laid out per view (tokens contiguous).
# ---------------------------------------------------------------------------
def _qkv_proj_kernel(x_ref, w_ref, q_ref, k_ref, v_ref, *, inner):
    th, width, dq = x_ref.shape
    x = x_ref[...].reshape(th * width, dq).astype(jnp.bfloat16)
    # single MXU pass against the fused [Wq*scale | Wk | Wv] weight
    y = jnp.dot(x, w_ref[...], preferred_element_type=jnp.float32)  # (tq, 3*inner)
    q_ref[...] = y[:, :inner].astype(jnp.bfloat16)
    k_ref[...] = y[:, inner:2 * inner].astype(jnp.bfloat16)
    v_ref[...] = y[:, 2 * inner:].astype(jnp.bfloat16)


def _qkv_projection(x_sp, w_qkv_t, *, H, width, inner):
    B, _, W, dq = x_sp.shape
    lh = H * width
    th1 = _pick_row_tile(H, width, 512)
    r1 = H // th1

    out_sd = jax.ShapeDtypeStruct((B, N_VIEWS, lh, inner), jnp.bfloat16)
    out_spec = pl.BlockSpec((None, None, th1 * width, inner),
                            lambda b, v, r: (b, v, r, 0))
    return pl.pallas_call(
        functools.partial(_qkv_proj_kernel, inner=inner),
        out_shape=(out_sd, out_sd, out_sd),
        grid_spec=pltpu.PrefetchScalarGridSpec(
            num_scalar_prefetch=0,
            grid=(B, N_VIEWS, r1),
            in_specs=[
                pl.BlockSpec((None, th1, width, dq), lambda b, v, r: (b, r, v, 0)),
                pl.BlockSpec((dq, 3 * inner), lambda b, v, r: (0, 0)),
            ],
            out_specs=[out_spec, out_spec, out_spec],
        ),
        compiler_params=pltpu.CompilerParams(
            dimension_semantics=("parallel", "parallel", "parallel"),
            vmem_limit_bytes=_VMEM_LIMIT),
    )(x_sp, w_qkv_t)


# ---------------------------------------------------------------------------
# Kernel 2: inter-view flash attention + fused output projection.
# ---------------------------------------------------------------------------
def _interview_attn_kernel(q_ref, k_ref, v_ref, wo_ref, bo_ref, o_ref,
                           m_scr, l_scr, acc_scr, *, heads, dim_head):
    view = pl.program_id(1)
    kt = pl.program_id(3)
    n_views = pl.num_programs(1)
    nkt = pl.num_programs(3)

    @pl.when(kt == 0)
    def _init():
        m_scr[...] = jnp.full_like(m_scr, -jnp.inf)
        l_scr[...] = jnp.zeros_like(l_scr)
        acc_scr[...] = jnp.zeros_like(acc_scr)

    # The torch right-neighbour slice of the last view is empty -> skip it.
    is_valid = jnp.logical_not(jnp.logical_and(view == n_views - 1, kt == nkt - 1))

    @pl.when(is_valid)
    def _update():
        q = q_ref[...]          # (tq, inner)  bf16, 1/sqrt(dim_head) folded into Wq
        k = k_ref[...]          # (lk, inner)  bf16
        vv = v_ref[...]         # (lk, inner)  bf16
        for h in range(heads):  # heads is small and static -> unrolled
            sl = slice(h * dim_head, (h + 1) * dim_head)
            qh = q[:, sl]
            kh = k[:, sl]
            vh = vv[:, sl]
            # NT matmul straight into the MXU (no materialised k transpose).
            s = lax.dot_general(qh, kh, (((1,), (1,)), ((), ())),
                                preferred_element_type=jnp.float32)  # (tq, lk)
            m_prev = m_scr[h]
            m_new = jnp.maximum(m_prev, jnp.max(s, axis=-1, keepdims=True))
            alpha = jnp.exp(m_prev - m_new)
            p = jnp.exp(s - m_new)
            l_scr[h] = alpha * l_scr[h] + jnp.sum(p, axis=-1, keepdims=True)
            acc_scr[h] = alpha * acc_scr[h] + jnp.dot(
                p.astype(jnp.bfloat16), vh, preferred_element_type=jnp.float32)
            m_scr[h] = m_new

    @pl.when(kt == nkt - 1)
    def _finalize():
        parts = []
        for h in range(heads):
            inv = pl.reciprocal(l_scr[h], approx=True)          # (tq, 1)
            parts.append((acc_scr[h] * inv).astype(jnp.bfloat16))
        o = jnp.concatenate(parts, axis=-1)                      # (tq, inner) bf16
        proj = jnp.dot(o, wo_ref[...], preferred_element_type=jnp.float32)
        proj = proj + bo_ref[...]
        th, width, dq = o_ref.shape
        o_ref[...] = proj.reshape(th, width, dq)


def _interview_attention(q_v, k_v, v_v, wo_t, bo_row, *, H, width, dq,
                         heads, dim_head, q_tile_rows):
    B, _, lh, inner = q_v.shape
    th = q_tile_rows
    nqt = H // th
    tq = th * width
    grid = (B, N_VIEWS, nqt, 2)   # (batch, view, q tile, neighbour kv) - kv last

    def q_index(b, view, qt, kt):
        return (b, view, qt, 0)

    def kv_index(b, view, qt, kt):
        # kt == 0 -> left neighbour (circular), kt == 1 -> right neighbour
        return (b, (view + N_VIEWS - 1 + 2 * kt) % N_VIEWS, 0, 0)

    def out_index(b, view, qt, kt):
        return (b, qt, view, 0)

    # NOTE: one KV block covers a whole neighbour view; for very large H this
    # could be split further along the kv grid axis.
    kv_spec = pl.BlockSpec((None, None, lh, inner), kv_index)

    out = pl.pallas_call(
        functools.partial(_interview_attn_kernel, heads=heads, dim_head=dim_head),
        out_shape=jax.ShapeDtypeStruct((B, H, N_VIEWS * width, dq), jnp.float32),
        grid_spec=pltpu.PrefetchScalarGridSpec(
            num_scalar_prefetch=0,
            grid=grid,
            in_specs=[
                pl.BlockSpec((None, None, tq, inner), q_index),
                kv_spec,
                kv_spec,
                pl.BlockSpec((inner, dq), lambda b, v, qt, kt: (0, 0)),
                pl.BlockSpec((1, dq), lambda b, v, qt, kt: (0, 0)),
            ],
            out_specs=pl.BlockSpec((None, th, width, dq), out_index),
            scratch_shapes=[
                pltpu.VMEM((heads, tq, 1), jnp.float32),         # running max
                pltpu.VMEM((heads, tq, 1), jnp.float32),         # running denom
                pltpu.VMEM((heads, tq, dim_head), jnp.float32),  # running numerator
            ]),
        compiler_params=pltpu.CompilerParams(
            dimension_semantics=("parallel", "parallel", "parallel", "arbitrary"),
            vmem_limit_bytes=_VMEM_LIMIT),
    )(q_v, k_v, v_v, wo_t, bo_row)
    return out


def interview_attention_two(x, wq, wk, wv, wo, bo, *, heads, dim_head,
                            q_tile_rows=None):
    """x: (B, N, query_dim) with N = 12*H*H tokens (H x 12H panorama, 6 views).

    Matches MemoryEfficientInterViewAttentionTwo.forward(x) with default args
    (self attention, no mask / additional tokens / cross-frame repeat;
    Dropout(p=0) is the identity)."""
    B, N, dq = x.shape
    inner = heads * dim_head
    assert wq.shape == (inner, dq) and wk.shape == (inner, dq) and wv.shape == (inner, dq)
    assert wo.shape == (dq, inner) and bo.shape == (dq,)

    H = int(math.sqrt(N // 12))      # same formula as the torch module
    W = N // H
    width = W // 6
    assert H * W == N and 6 * width == W, "tokens must form an H x 12H panorama"
    assert width % 8 == 0, "view width must be a multiple of 8 for TPU tiling"

    if q_tile_rows is None:
        q_tile_rows = _pick_row_tile(H, width, 512)
    assert H % q_tile_rows == 0 and (q_tile_rows * width) % 16 == 0

    # Fold the 1/sqrt(dim_head) attention scale into Wq and fuse Wq/Wk/Wv.
    scale = dim_head ** -0.5
    w_qkv_t = jnp.concatenate([(wq * scale).T, wk.T, wv.T],
                              axis=1).astype(jnp.bfloat16)        # (dq, 3*inner)
    wo_t = wo.T.astype(jnp.bfloat16)                              # (inner, dq)
    bo_row = bo.reshape(1, dq).astype(jnp.float32)

    x_sp = x.reshape(B, H, W, dq)                                 # free reshape
    q_v, k_v, v_v = _qkv_projection(x_sp, w_qkv_t, H=H, width=width, inner=inner)
    out = _interview_attention(q_v, k_v, v_v, wo_t, bo_row, H=H, width=width,
                               dq=dq, heads=heads, dim_head=dim_head,
                               q_tile_rows=q_tile_rows)
    return out.reshape(B, N, dq)


# ---------------------------------------------------------------------------
# Pure-JAX f32 reference mirroring the PyTorch forward exactly.
# ---------------------------------------------------------------------------
def reference(x, wq, wk, wv, wo, bo, heads, dim_head):
    B, N, dq = x.shape
    inner = heads * dim_head
    q_all = x @ wq.T
    k_all = x @ wk.T
    v_all = x @ wv.T
    H = int(math.sqrt(N // 12))
    W = N // H
    width = W // 6
    qs = q_all.reshape(B, H, W, inner)
    ks = k_all.reshape(B, H, W, inner)
    vs = v_all.reshape(B, H, W, inner)

    def mha(q, k, v):
        lq, lk = q.shape[1], k.shape[1]
        qh = q.reshape(B, lq, heads, dim_head).transpose(0, 2, 1, 3)
        kh = k.reshape(B, lk, heads, dim_head).transpose(0, 2, 1, 3)
        vh = v.reshape(B, lk, heads, dim_head).transpose(0, 2, 1, 3)
        s = jnp.einsum('bhqd,bhkd->bhqk', qh, kh) * (dim_head ** -0.5)
        p = jax.nn.softmax(s, axis=-1)
        o = jnp.einsum('bhqk,bhkd->bhqd', p, vh)
        return o.transpose(0, 2, 1, 3).reshape(B, lq, inner)

    outs = []
    for i in range(0, W, width):
        q = qs[:, :, i:i + width, :].reshape(B, H * width, inner)
        if i == 0:
            kk = jnp.concatenate([ks[:, :, 5 * width:W, :], ks[:, :, width:2 * width, :]], axis=2)
            vv = jnp.concatenate([vs[:, :, 5 * width:W, :], vs[:, :, width:2 * width, :]], axis=2)
        else:
            # NB: for i == 5*width the second slice is empty (matches torch).
            kk = jnp.concatenate([ks[:, :, i - width:i, :], ks[:, :, i + width:i + 2 * width, :]], axis=2)
            vv = jnp.concatenate([vs[:, :, i - width:i, :], vs[:, :, i + width:i + 2 * width, :]], axis=2)
        lk = kk.shape[2]
        o = mha(q, kk.reshape(B, H * lk, inner), vv.reshape(B, H * lk, inner))
        outs.append(o.reshape(B, H, width, inner))
    out = jnp.concatenate(outs, axis=2).reshape(B, N, inner)
    return out @ wo.T + bo[None, None, :]


if __name__ == "__main__":
    B = 2
    heads, dim_head = 4, 32          # inner_dim = 128 (lane dense)
    query_dim = 64
    H_img = 4                        # panorama 4 x 48: six 4x8 views, N = 192
    N = 12 * H_img * H_img
    inner = heads * dim_head

    key = jax.random.PRNGKey(0)
    kx, kq, kk_, kv_, ko, kb = jax.random.split(key, 6)
    x = jax.random.normal(kx, (B, N, query_dim), dtype=jnp.float32)
    wq = jax.random.normal(kq, (inner, query_dim), jnp.float32) * query_dim ** -0.5
    wk = jax.random.normal(kk_, (inner, query_dim), jnp.float32) * query_dim ** -0.5
    wv = jax.random.normal(kv_, (inner, query_dim), jnp.float32) * query_dim ** -0.5
    wo = jax.random.normal(ko, (query_dim, inner), jnp.float32) * inner ** -0.5
    bo = jax.random.normal(kb, (query_dim,), jnp.float32) * 0.1

    # q_tile_rows=2 -> two query tiles per view, exercising the online softmax
    # across both the q-tile and neighbour-kv grid axes.
    out = interview_attention_two(x, wq, wk, wv, wo, bo, heads=heads,
                                  dim_head=dim_head, q_tile_rows=2)
    out = jax.block_until_ready(out)

    ref = jax.block_until_ready(reference(x, wq, wk, wv, wo, bo, heads, dim_head))
    # bf16 MXU inputs with f32 accumulation -> slightly looser tolerance
    np.testing.assert_allclose(np.asarray(out), np.asarray(ref), rtol=3e-2, atol=3e-2)
    print("KERNEL_OK")
</pallas_src>

<mosaic_0001>
module attributes {stable_mosaic.version = 11 : i64} {
  func.func @_qkv_proj_kernel(%arg0: i32, %arg1: i32, %arg2: i32, %arg3: memref<1x4x8x64xf32, #tpu.memory_space<vmem>>, %arg4: memref<64x384xbf16, #tpu.memory_space<vmem>>, %arg5: memref<1x1x32x128xbf16, #tpu.memory_space<vmem>>, %arg6: memref<1x1x32x128xbf16, #tpu.memory_space<vmem>>, %arg7: memref<1x1x32x128xbf16, #tpu.memory_space<vmem>>) attributes {dimension_semantics = [#tpu.dimension_semantics<parallel>, #tpu.dimension_semantics<parallel>, #tpu.dimension_semantics<parallel>], iteration_bounds = array<i64: 2, 6, 1>, scalar_prefetch = 0 : i64, scratch_operands = 0 : i64, tpu.core_type = #tpu.core_type<tc>, window_params = [{transform_indices = @transform_0, window_bounds = array<i64: 1, 4, 8, 64>}, {pipeline_mode = #tpu.pipeline_mode<synchronous>, transform_indices = @transform_1, window_bounds = array<i64: 64, 384>}, {transform_indices = @transform_2, window_bounds = array<i64: 1, 1, 32, 128>}, {transform_indices = @transform_3, window_bounds = array<i64: 1, 1, 32, 128>}, {transform_indices = @transform_4, window_bounds = array<i64: 1, 1, 32, 128>}]} {
    %c0 = arith.constant 0 : index
    %c0_0 = arith.constant 0 : index
    %c0_1 = arith.constant 0 : index
    %c0_2 = arith.constant 0 : index
    %0 = vector.load %arg3[%c0, %c0_0, %c0_1, %c0_2] : memref<1x4x8x64xf32, #tpu.memory_space<vmem>>, vector<1x4x8x64xf32>
    %1 = vector.shape_cast %0 : vector<1x4x8x64xf32> to vector<4x8x64xf32>
    %2 = vector.shape_cast %1 : vector<4x8x64xf32> to vector<32x64xf32>
    %3 = arith.truncf %2 : vector<32x64xf32> to vector<32x64xbf16>
    %c0_3 = arith.constant 0 : index
    %c0_4 = arith.constant 0 : index
    %4 = vector.load %arg4[%c0_3, %c0_4] : memref<64x384xbf16, #tpu.memory_space<vmem>>, vector<64x384xbf16>
    %cst = arith.constant dense<0.000000e+00> : vector<32x384xf32>
    %5 = tpu.matmul %3, %4, %cst {dimension_numbers = #tpu.dot_dimension_numbers<[1], [0], [0], [1], [0, 0, 1, 1], [], []>} : vector<32x64xbf16>, vector<64x384xbf16>, vector<32x384xf32> -> vector<32x384xf32>
    %6 = vector.extract_strided_slice %5 {offsets = [0, 0], sizes = [32, 128], strides = [1, 1]} : vector<32x384xf32> to vector<32x128xf32>
    %7 = arith.truncf %6 : vector<32x128xf32> to vector<32x128xbf16>
    %c0_5 = arith.constant 0 : index
    %c0_6 = arith.constant 0 : index
    %c0_7 = arith.constant 0 : index
    %c0_8 = arith.constant 0 : index
    %8 = vector.load %arg5[%c0_5, %c0_6, %c0_7, %c0_8] : memref<1x1x32x128xbf16, #tpu.memory_space<vmem>>, vector<1x1x32x128xbf16>
    %9 = vector.shape_cast %8 : vector<1x1x32x128xbf16> to vector<32x128xbf16>
    %10 = vector.shape_cast %7 : vector<32x128xbf16> to vector<1x1x32x128xbf16>
    tpu.vector_store %arg5[%c0_5, %c0_6, %c0_7, %c0_8], %10 {strides = array<i32>} : memref<1x1x32x128xbf16, #tpu.memory_space<vmem>>, vector<1x1x32x128xbf16>,
    %11 = vector.extract_strided_slice %5 {offsets = [0, 128], sizes = [32, 128], strides = [1, 1]} : vector<32x384xf32> to vector<32x128xf32>
    %12 = arith.truncf %11 : vector<32x128xf32> to vector<32x128xbf16>
    %c0_9 = arith.constant 0 : index
    %c0_10 = arith.constant 0 : index
    %c0_11 = arith.constant 0 : index
    %c0_12 = arith.constant 0 : index
    %13 = vector.load %arg6[%c0_9, %c0_10, %c0_11, %c0_12] : memref<1x1x32x128xbf16, #tpu.memory_space<vmem>>, vector<1x1x32x128xbf16>
    %14 = vector.shape_cast %13 : vector<1x1x32x128xbf16> to vector<32x128xbf16>
    %15 = vector.shape_cast %12 : vector<32x128xbf16> to vector<1x1x32x128xbf16>
    tpu.vector_store %arg6[%c0_9, %c0_10, %c0_11, %c0_12], %15 {strides = array<i32>} : memref<1x1x32x128xbf16, #tpu.memory_space<vmem>>, vector<1x1x32x128xbf16>,
    %16 = vector.extract_strided_slice %5 {offsets = [0, 256], sizes = [32, 128], strides = [1, 1]} : vector<32x384xf32> to vector<32x128xf32>
    %17 = arith.truncf %16 : vector<32x128xf32> to vector<32x128xbf16>
    %c0_13 = arith.constant 0 : index
    %c0_14 = arith.constant 0 : index
    %c0_15 = arith.constant 0 : index
    %c0_16 = arith.constant 0 : index
    %18 = vector.load %arg7[%c0_13, %c0_14, %c0_15, %c0_16] : memref<1x1x32x128xbf16, #tpu.memory_space<vmem>>, vector<1x1x32x128xbf16>
    %19 = vector.shape_cast %18 : vector<1x1x32x128xbf16> to vector<32x128xbf16>
    %20 = vector.shape_cast %17 : vector<32x128xbf16> to vector<1x1x32x128xbf16>
    tpu.vector_store %arg7[%c0_13, %c0_14, %c0_15, %c0_16], %20 {strides = array<i32>} : memref<1x1x32x128xbf16, #tpu.memory_space<vmem>>, vector<1x1x32x128xbf16>,
    return
  }
  func.func @transform_0(%arg0: i32, %arg1: i32, %arg2: i32) -> (i32, i32, i32, i32) {
    %c0_i32 = arith.constant 0 : i32
    %c0_i32_0 = arith.constant 0 : i32
    return %arg0, %arg2, %arg1, %c0_i32 : i32, i32, i32, i32
  }
  func.func @transform_1(%arg0: i32, %arg1: i32, %arg2: i32) -> (i32, i32) {
    %c0_i32 = arith.constant 0 : i32
    %c0_i32_0 = arith.constant 0 : i32
    %c0_i32_1 = arith.constant 0 : i32
    return %c0_i32, %c0_i32_0 : i32, i32
  }
  func.func @transform_2(%arg0: i32, %arg1: i32, %arg2: i32) -> (i32, i32, i32, i32) {
    %c0_i32 = arith.constant 0 : i32
    %c0_i32_0 = arith.constant 0 : i32
    return %arg0, %arg1, %arg2, %c0_i32 : i32, i32, i32, i32
  }
  func.func @transform_3(%arg0: i32, %arg1: i32, %arg2: i32) -> (i32, i32, i32, i32) {
    %c0_i32 = arith.constant 0 : i32
    %c0_i32_0 = arith.constant 0 : i32
    return %arg0, %arg1, %arg2, %c0_i32 : i32, i32, i32, i32
  }
  func.func @transform_4(%arg0: i32, %arg1: i32, %arg2: i32) -> (i32, i32, i32, i32) {
    %c0_i32 = arith.constant 0 : i32
    %c0_i32_0 = arith.constant 0 : i32
    return %arg0, %arg1, %arg2, %c0_i32 : i32, i32, i32, i32
  }
}

</mosaic_0001>

<bundles_post_ra>
// kernel: tpu_custom_call.1
= control target key start
LH: loop header
LB: loop body
LE: loop exit
PB: predicated region body
PF: predicated region fallthrough
CT: control target
= control target key end

     0   :  { %s1454_s0 = inlined_call_operand.hbm [shape: f32[2,4,48,64], index: 0, kind: input, shape index: {}]   ;;  %s1455_s1 = inlined_call_operand.hbm [shape: bf16[64,384], index: 1, kind: input, shape index: {}]   ;;  %s1456_s2 = inlined_call_operand.hbm [shape: bf16[2,6,32,128], index: 2, kind: output, shape index: {0}]   ;;  %s1457_s3 = inlined_call_operand.hbm [shape: bf16[2,6,32,128], index: 3, kind: output, shape index: {1}]   ;;  %s1458_s4 = inlined_call_operand.hbm [shape: bf16[2,6,32,128], index: 4, kind: output, shape index: {2}]  }
   0x1   :  { %1466 = sst [smem:[#allocation19_spill]] %s1455_s1 }
   0x2   :  { %1467 = sst [smem:[#allocation20_spill]] %s1457_s3 }
   0x3   :  { %1468 = sst [smem:[#allocation21_spill]] %s1458_s4 }
   0x4   :  { %10 = vsyncpa [#allocation3], 0 }
   0x5   :  { %12 = vsyncpa [#allocation3 + $0x1], 0 }
   0x6   :  { %13 = vsyncpa [#allocation6], 0 }
   0x7   :  { %14 = vsyncpa [#allocation4], 0 }
   0x8   :  { %16 = vsyncpa [#allocation4 + $0x1], 0 }
   0x9   :  { %17 = vsyncpa [#allocation9], 0 }
   0xa   :  { %19 = vsyncpa [#allocation9 + $0x1], 0  ;;  %s1216_s15 = smov 0   ;;  %s1218_s16 = smov 0  }
   0xb   :  { %s1220_s17 = smov 0   ;;  %s1222_s18 = smov 0  }
   0xc   :  { %s1224_s19 = smov 0   ;;  %s1226_s20 = smov 0  }
   0xd   :  { %s1228_s21 = smov 0   ;;  %s1230_s22 = smov 0  }
   0xe LB: > { %1469 = sst [smem:[#allocation15_spill]] %s1153_s15  ;;  %s1257_s23 = sadd.s32 4294967295, %s1181_s22   ;;  %s1181_s22 = sphi %s1230_s22, %s25_s22   ;;  %s1177_s21 = sphi %s1228_s21, %s1492_s21   ;;  %s1173_s20 = sphi %s1226_s20, %s1491_s20   ;;  %s1169_s19 = sphi %s1224_s19, %s1490_s19   ;;  %s1165_s18 = sphi %s1222_s18, %s1489_s18   ;;  %s1161_s17 = sphi %s1220_s17, %s1488_s17   ;;  %s1157_s16 = sphi %s1218_s16, %s1487_s16   ;;  %s1153_s15 = sphi %s1216_s15, %s1486_s15  }
   0xf   : > { %s1459_s24 = sadd.s32 4294967294, %s1181_s22   ;;  %p68_p0 = scmp.ne.s32.totalorder %s1157_s16, %s1153_s15 }
  0x10   : > { %p69_p1 = scmp.eq.s32.totalorder %s1257_s23, 0  ;;  %p117_p2 = scmp.eq.s32.totalorder %s1257_s23, 11 }
  0x11   : > { %p123_p3 = scmp.eq.s32.totalorder %s1459_s24, 11  ;;  %p724_p5 = scmp.ge.s32.totalorder %s1181_s22, 1 }
  0x12   : > { %p1268_p4 = por %p69_p1, %p68_p0  ;;  %p190_p7 = scmp.lt.s32.totalorder %s1181_s22, 13 }
  0x13   : > { %p1273_p6 = por %p123_p3, %p68_p0  ;;  %s1473_s1 = sld [smem:[#allocation19_spill]] }
  0x14   : > { %p1281_p8 = pnand %p724_p5, %p190_p7  ;;  %s1183_s5 = smov [#allocation5]  }
  0x15   : > { %s1471_s26 = scalar_select %p1273_p6, 1, 0 }
  0x16   : > { %p865_p9 = pneg %p1281_p8  ;;  %s203_s6 = sshll.u32 %s1183_s5, 4  ;;  %s204_s6 = int_to_ptr.vmem [resolvable:$true] %s203_s6 }
  0x17   : > { %1472 = sst [smem:[#allocation16_spill]] %s1471_s26  ;;  %s1184_s7 = smov 192  }
  0x18   : > { %p866_p10 = pnand %p865_p9, %p69_p1  ;;  %s1185_s8 = smov 12  }
  0x19   : > { %s201_s29 = sshll.u32 %s1473_s1, 4  ;;  %s40_s9 = sadd.s32 1, %s1173_s20  ;;  %s202_s29 = int_to_ptr.hbm [resolvable:$true] %s201_s29 }
  0x1a   : > { %868 = dma.hbm_to_vmem [thread:$0]  (!%p866_p10), %s202_s29, 1536, %s204_s6, [#allocation6], %s1184_s7, %s1184_s7, %s1185_s8  }
  0x1b   : > { %p42_p11 = scmp.ge.s32.totalorder %s40_s9, 6  ;;  %s44_s10 = sadd.s32 1, %s1177_s21 }
  0x1c   : > { %s55_s11 = sadd.s32 1, %s1161_s17  ;;  %p62_p12 = scmp.ne.s32.totalorder %s1161_s17, %s1157_s16 }
  0x1d   : > { %s1494_s9 = smov (%p42_p11, %s40_s9), 0  ;;  %s1496_s10 = smov (!%p42_p11, %s44_s10), %s1177_s21 }
  0x1e   : > { %1475 = sst [smem:[#allocation17_spill]] %s1494_s9  ;;  %s51_s12 = ssub.s32 %s1173_s20, %s1494_s9 }
  0x1f   : > { %p63_p13 = scmp.eq.s32.totalorder %s1181_s22, 0  ;;  %p46_p0 = scmp.ge.s32.totalorder %s1496_s10, 2 }
  0x20   : > { %p1302_p3 = por %p117_p2, %p62_p12  ;;  %p884_p7 = scmp.lt.s32.totalorder %s1181_s22, 12 }
  0x21   : > { %p1306_p5 = por %p63_p13, %p62_p12  ;;  %s1498_s10 = smov (%p46_p0, %s1496_s10), 0 }
  0x22   : > { %1478 = sst [smem:[#allocation18_spill]] %s1498_s10  ;;  %s217_s27 = sand.u32 1, %s1161_s17  }
  0x23   : > { %s849_s28 = smul.u32 24, %s1177_s21  ;;  %s48_s29 = ssub.s32 %s1177_s21, %s1498_s10 }
  0x24   : > { %s52_s5 = sor.u32 %s51_s12, %s48_s29  ;;  %s727_s6 = sshll.u32 %s217_s27, 5 }
  0x25   : > { %p53_p9 = scmp.eq.s32.totalorder %s52_s5, 0  ;;  %s228_s7 = sadd.s32 %s1173_s20, %s849_s28 }
  0x26   : > { %s221_s8 = scalar_lea.vmem [#allocation2], %s727_s6  ;;  %s728_s9 = sshll.u32 %s228_s7, 3 }
  0x27   : > { %s233_s24 = sshll.u32 %s221_s8, 4  ;;  %s230_s4 = scalar_lea.hbm %s1454_s0, %s728_s9  ;;  %s234_s24 = int_to_ptr.vmem [resolvable:$true] %s233_s24 }
  0x28   : > { %s1319_s1 = scalar_select %p53_p9, %s1161_s17, %s55_s11  }
  0x29   : > { %p870_p2 = pnand %p884_p7, %p1306_p5  ;;  %s231_s3 = sshll.u32 %s230_s4, 4  ;;  %s232_s3 = int_to_ptr.hbm [resolvable:$true] %s231_s3 }
  0x2a   : > { %s218_s10 = scalar_lea.sflag [#allocation3], %s217_s27  ;;  %s1186_s12 = smov 768  }
  0x2b   : > { %s1187_s29 = smov 128   ;;  %s1188_s5 = smov 8  }
  0x2c   : > { %872 = dma.hbm_to_vmem [thread:$0]  (!%p870_p2), %s232_s3, 512, %s234_s24, %s218_s10, %s1186_s12, %s1187_s29, %s1188_s5  }
  0x2d   : > { %245 = sbr.rel (%p1281_p8) target bundleno = 247 (0xf7), region = 28  ;;  %s1331_s11 = sand.u32 (!%p1281_p8), 1, %s1157_s16  }
  0x2e   : > { %s730_s15 = sshll.u32 (!%p1281_p8), %s1331_s11, 5  ;;  %s248_s26 = scalar_lea.sflag (!%p1281_p8), [#allocation3], %s1331_s11 }
  0x2f   : > { %s1335_s9 = scalar_lea.vmem (!%p1281_p8), [#allocation2], %s730_s15 }
  0x32   : > { %1136 = dma.done.wait (%p1268_p4), %s248_s26, 512  }
  0x33   : > { %1138 = vsyncadd (%p1268_p4), %s248_s26, 4294966784 }
  0x34   : > { %1140 = dma.done.wait (%p69_p1), [#allocation6], 1536  }
  0x35   : > { %1142 = vsyncadd (%p69_p1), [#allocation6], 4294965760  ;;  %v809_v0 = vld [vmem:[#allocation5 + $0x4c] sm:$0xf]  ;;  %v775_v1 = vld [vmem:[#allocation5 + $0x54] sm:$0xf0] }
  0x36   : > { %v781_v2 = vld [vmem:[#allocation5 + $0x50] sm:$0xf]  ;;  %v778_v3 = vor.u32 %v809_v0, %v775_v1  ;;  %v811_v4 = vld [vmem:[#allocation5 + $0x58] sm:$0xf0]  ;;  %v806_v5 = vld [vmem:[#allocation5 + $0x34] sm:$0xf] }
  0x37   : > { %v763_v6 = vld [vmem:[#allocation5 + $0x3c] sm:$0xf0]  ;;  %v782_v7 = vor.u32 %v811_v4, %v781_v2  ;;  %v769_v8 = vld [vmem:[#allocation5 + $0x38] sm:$0xf]  ;;  %v808_v9 = vld [vmem:[#allocation5 + $0x40] sm:$0xf0] }
  0x38   : > { %v773_v10 = vld [vmem:[#allocation5 + $0x48] sm:$0xf]  ;;  %413 = vmatpush.bf16.msra.mxu1 %v778_v3  ;;  %v766_v11 = vor.u32 %v806_v5, %v763_v6  ;;  %v810_v12 = vld [vmem:[#allocation5 + $0x50] sm:$0xf0]  ;;  %v770_v13 = vor.u32 %v808_v9, %v769_v8  ;;  %v803_v15 = vld [vmem:[#allocation5 + $0x1c] sm:$0xf] }
  0x39   : > { %432 = vmatpush.bf16.msra.mxu2 %v782_v7  ;;  %v774_v14 = vor.u32 %v810_v12, %v773_v10  ;;  %v751_v16 = vld [vmem:[#allocation5 + $0x24] sm:$0xf0]  ;;  %v761_v17 = vld [vmem:[#allocation5 + $0x30] sm:$0xf]  ;;  %v757_v18 = vld [vmem:[#allocation5 + $0x20] sm:$0xf] }
  0x3a   : > { %v805_v19 = vld [vmem:[#allocation5 + $0x28] sm:$0xf0]  ;;  %v807_v20 = vld [vmem:[#allocation5 + $0x38] sm:$0xf0]  ;;  %v754_v22 = vor.u32 %v803_v15, %v751_v16  ;;  %v749_v23 = vld [vmem:[#allocation5 + $0x18] sm:$0xf] }
  0x3b   : > { %845 = vmatpush.bf16.msra.mxu3 %v774_v14  ;;  %v762_v21 = vor.u32 %v807_v20, %v761_v17  ;;  %394 = vmatpush.bf16.msra.mxu0 %v774_v14  ;;  %v804_v24 = vld [vmem:[#allocation5 + $0x20] sm:$0xf0]  ;;  %v758_v25 = vor.u32 %v805_v19, %v757_v18  ;;  %v739_v27 = vld [vmem:[#allocation5 + $0xc] sm:$0xf0]  ;;  %v745_v28 = vld [vmem:[#allocation5 + $0x8] sm:$0xf] }
  0x3c   : > { %414 = vmatpush.bf16.msra.mxu1 %v766_v11  ;;  %v800_v26 = vld [vmem:[#allocation5 + $0x4] sm:$0xf]  ;;  %v802_v29 = vld [vmem:[#allocation5 + $0x10] sm:$0xf0]  ;;  %v750_v31 = vor.u32 %v804_v24, %v749_v23  ;;  %v298_v33 = vld [vmem:[%s1335_s9 + $0x8] sm:$0xff]  ;;  %vm383_vm0 = vcmask 523264  }
  0x3d   : > { %433 = vmatpush.bf16.msra.mxu2 %v770_v13  ;;  %v297_v30 = vld [vmem:[%s1335_s9] sm:$0xff]  ;;  %v742_v32 = vor.u32 %v800_v26, %v739_v27  ;;  %v801_v35 = vld [vmem:[#allocation5 + $0x8] sm:$0xf0]  ;;  %v746_v36 = vor.u32 %v802_v29, %v745_v28  ;;  %v299_v39 = vld [vmem:[%s1335_s9 + $0x10] sm:$0xff]  ;;  %s850_s3 = smul.u32 24, %s1169_s19  ;;  %s792_s4 = sshll.u32 %s1165_s18, 2 }
  0x3e   : > { %v737_v34 = vld [vmem:[#allocation5] sm:$0xf]  ;;  %v301_v37 = vpack.c.bf16 %v298_v33, %v297_v30  ;;  %v300_v40 = vld [vmem:[%s1335_s9 + $0x18] sm:$0xff]  ;;  %s732_s24 = sshll.u32 %s1331_s11, 4  ;;  %s1479_s29 = sld [smem:[#allocation20_spill]] }
  0x3f   : > { %846 = vmatpush.bf16.msra.mxu3 %v762_v21  ;;  %395 = vmatpush.bf16.msra.mxu0 %v762_v21  ;;  %v738_v38 = vor.u32 %v801_v35, %v737_v34  ;;  %v302_v41 = vpack.c.bf16 %v300_v40, %v299_v39  ;;  %s495_s25 = sadd.s32 %s850_s3, %s792_s4  ;;  %s1354_s10 = scalar_lea.vmem [#allocation8], %s732_s24 }
  0x40   : > { %415 = vmatpush.bf16.msra.mxu1 %v754_v22  ;;  %s1352_s30 = sshll.u32 %s495_s25, 2  ;;  %s277_s19 = scalar_lea.vmem [#allocation7], %s732_s24 }
  0x41   : > { %434 = vmatpush.bf16.msra.mxu2 %v758_v25  ;;  %s497_s18 = scalar_lea.hbm %s1456_s2, %s1352_s30  ;;  %s498_s28 = sshll.u32 %s277_s19, 4  ;;  %s499_s28 = int_to_ptr.vmem [resolvable:$true] %s498_s28 }
  0x42   : > { %s1361_s6 = sshll.u32 %s497_s18, 4  ;;  %s1363_s7 = scalar_lea.vmem [#allocation10], %s732_s24  ;;  %s501_s6 = int_to_ptr.hbm [resolvable:$true] %s1361_s6 }
  0x43   : > { %847 = vmatpush.bf16.msra.mxu3 %v750_v31  ;;  %396 = vmatpush.bf16.msra.mxu0 %v750_v31  ;;  %s519_s15 = sshll.u32 %s1354_s10, 4  ;;  %s472_s26 = scalar_lea.sflag [#allocation4], %s1331_s11  ;;  %s520_s15 = int_to_ptr.vmem [resolvable:$true] %s519_s15 }
  0x44   : > { %416 = vmatpush.bf16.msra.mxu1 %v742_v32  ;;  %s518_s5 = scalar_lea.hbm %s1479_s29, %s1352_s30  ;;  %s1033_s9 = sshra.s32 %s501_s6, 4  ;;  %s1034_s9 = int_to_ptr.hbm [resolvable:$true] %s1033_s9 }
  0x45   : > { %435 = vmatpush.bf16.msra.mxu2 %v746_v36  ;;  %s1035_s3 = scalar_lea.hbm %s1034_s9, 16  ;;  %s1039_s25 = scalar_lea.hbm %s1456_s2, 192 }
  0x46   : > { %p1036_p1 = scmp.ne.s32.totalorder %s1034_s9, %s1035_s3  ;;  %p1040_p10 = scmp.lt.s32.totalorder %s1034_s9, %s1456_s2 }
  0x47   : > { %785 = vmatmul.msk.bf16.vlgmr.msra.gmra.mxu1 %vm383_vm0, %v301_v37  ;;  %848 = vmatpush.bf16.msra.mxu3 %v738_v38  ;;  %p1041_p11 = scmp.lt.s32.totalorder %s1039_s25, %s1035_s3 }
  0x48   : > { %787 = vmatmul.msk.bf16.vlgmr.msra.gmra.mxu2 %vm383_vm0, %v301_v37  ;;  %397 = vmatpush.bf16.msra.mxu0 %v738_v38  ;;  %p1037_p4 = pnand %p1036_p1, %p1302_p3 }
  0x49   : > { %p1042_p12 = por %p1041_p11, %p1040_p10 }
  0x4a   : > { %784 = vmatmul.msk.bf16.vlgmr.msra.gmra.mxu3 %vm383_vm0, %v302_v41  ;;  %p1038_p8 = pneg %p1037_p4 }
  0x4b   : > { %783 = vmatmul.msk.bf16.vlgmr.msra.gmra.mxu0 %vm383_vm0, %v301_v37 }
  0x4c   : > { %p1043_p13 = pnand %p1042_p12, %p1038_p8 }
  0x57   : > { %786 = vmatmul.msk.bf16.gmra.mxu1 %vm383_vm0, %v302_v41 }
  0x58   : > { %788 = vmatmul.msk.bf16.gmra.mxu2 %vm383_vm0, %v302_v41 }
  0xc4   : > { %v418_v42 = vpop.f32.mrf.mxu1 }
  0xc8   : > { %v399_v43 = vpop.f32.mrf.mxu0 }
  0xcb   : > { %v437_v44 = vpop.f32.mrf.mxu2 }
  0xcc   : > { %v420_v45 = vpop.f32.mrf.mxu1 }
  0xcd   : > { %v825_v46 = vpack.c.bf16 %v420_v45, %v418_v42  ;;  %v404_v47 = vpop.f32.mrf.mxu3 }
  0xcf   : > { %826 = vst [vmem:[%s1354_s10] sm:$0xff] %v825_v46  }
  0xd0   : > { %v401_v48 = vpop.f32.mrf.mxu0 }
  0xd1   : > { %v815_v49 = vpack.c.bf16 %v401_v48, %v399_v43 }
  0xd3   : > { %v439_v50 = vpop.f32.mrf.mxu2  ;;  %816 = vst [vmem:[%s277_s19] sm:$0xff] %v815_v49  }
  0xd4   : > { %v835_v51 = vpack.c.bf16 %v439_v50, %v437_v44  ;;  %v423_v52 = vpop.f32.mrf.mxu1 }
  0xd5   : > { %v406_v53 = vpop.f32.mrf.mxu3 }
  0xd6   : > { %836 = vst [vmem:[%s1363_s7] sm:$0xff] %v835_v51   ;;  %v820_v54 = vpack.c.bf16 %v406_v53, %v404_v47 }
  0xd8   : > { %842 = vst [vmem:[%s277_s19 + $0x8] sm:$0xff] %v820_v54  }
  0xd9   : > { %1046 = shalt.err (!%p1043_p13)
}
  0xda   : > { %s1189_s11 = smov 64   ;;  %s1190_s18 = smov 4  }
  0xdb   : > { %859 = dma.vmem_to_hbm [thread:$0]  (%p1302_p3), %s499_s28, 256, %s501_s6, %s472_s26, %s1189_s11, %s1189_s11, %s1190_s18   ;;  %v442_v55 = vpop.f32.mrf.mxu2 }
  0xdc   : > { %s476_s19 = sand.u32 1, %s1257_s23   ;;  %s521_s8 = sshll.u32 %s518_s5, 4  ;;  %v425_v56 = vpop.f32.mrf.mxu1  ;;  %s522_s8 = int_to_ptr.hbm [resolvable:$true] %s521_s8 }
  0xdd   : > { %v830_v57 = vpack.c.bf16 %v425_v56, %v423_v52  ;;  %s1480_s3 = sld [smem:[#allocation21_spill]]  ;;  %s1392_s24 = scalar_lea.sflag [#allocation9], %s476_s19 }
  0xde   : > { %s1061_s25 = sshra.s32 %s522_s8, 4  ;;  %s1067_s6 = scalar_lea.hbm %s1479_s29, 192  ;;  %s1062_s25 = int_to_ptr.hbm [resolvable:$true] %s1061_s25 }
  0xdf   : > { %843 = vst [vmem:[%s1354_s10 + $0x8] sm:$0xff] %v830_v57   ;;  %s1063_s14 = scalar_lea.hbm %s1062_s25, 16  ;;  %p1068_p9 = scmp.lt.s32.totalorder %s1062_s25, %s1479_s29 }
  0xe0   : > { %p1064_p0 = scmp.ne.s32.totalorder %s1062_s25, %s1063_s14  ;;  %p1069_p2 = scmp.lt.s32.totalorder %s1067_s6, %s1063_s14 }
  0xe2   : > { %p1065_p5 = pnand %p1064_p0, %p1302_p3  ;;  %p1070_p1 = por %p1069_p2, %p1068_p9 }
  0xe3   : > { %s539_s4 = scalar_lea.hbm %s1480_s3, %s1352_s30 }
  0xe4   : > { %p1066_p7 = pneg %p1065_p5 }
  0xe6   : > { %p1071_p4 = pnand %p1070_p1, %p1066_p7 }
  0xe8   : > { %1074 = shalt.err (!%p1071_p4)
}
  0xe9   : > { %860 = dma.vmem_to_hbm [thread:$0]  (%p1302_p3), %s520_s15, 256, %s522_s8, %s1392_s24, %s1189_s11, %s1189_s11, %s1190_s18   ;;  %v444_v58 = vpop.f32.mrf.mxu2 }
  0xea   : > { %s540_s30 = sshll.u32 %s1363_s7, 4  ;;  %s542_s10 = sshll.u32 %s539_s4, 4  ;;  %v840_v59 = vpack.c.bf16 %v444_v58, %v442_v55  ;;  %s541_s30 = int_to_ptr.vmem [resolvable:$true] %s540_s30  ;;  %s543_s10 = int_to_ptr.hbm [resolvable:$true] %s542_s10 }
  0xeb   : > { %s1089_s27 = sshra.s32 %s543_s10, 4  ;;  %s1095_s25 = scalar_lea.hbm %s1480_s3, 192  ;;  %s1090_s27 = int_to_ptr.hbm [resolvable:$true] %s1089_s27 }
  0xec   : > { %844 = vst [vmem:[%s1363_s7 + $0x8] sm:$0xff] %v840_v59   ;;  %s1091_s19 = scalar_lea.hbm %s1090_s27, 16  ;;  %p1096_p12 = scmp.lt.s32.totalorder %s1090_s27, %s1480_s3 }
  0xed   : > { %p1092_p8 = scmp.ne.s32.totalorder %s1090_s27, %s1091_s19  ;;  %p1097_p13 = scmp.lt.s32.totalorder %s1095_s25, %s1091_s19 }
  0xef   : > { %p1093_p10 = pnand %p1092_p8, %p1302_p3  ;;  %p1098_p0 = por %p1097_p13, %p1096_p12 }
  0xf1   : > { %p1094_p11 = pneg %p1093_p10 }
  0xf3   : > { %p1099_p5 = pnand %p1098_p0, %p1094_p11 }
  0xf5   : > { %1102 = shalt.err (!%p1099_p5)
}
  0xf6   : > { %861 = dma.vmem_to_hbm [thread:$0]  (%p1302_p3), %s541_s30, 256, %s543_s10, %s1392_s24, %s1189_s11, %s1189_s11, %s1190_s18  }
  0xf7 PF: > { %s1481_s7 = sld [smem:[#allocation15_spill]]  ;;  %p886_p7 = scmp.ge.s32.totalorder %s1181_s22, 2 }
  0xf9   : > { %p874_p9 = pnand %p886_p7, %p1273_p6 }
  0xfb   : > { %p875_p2 = pneg %p874_p9 }
  0xfd   : > { %s557_s4 = sand.u32 1, %s1481_s7  }
  0xfe   : > { %s558_s23 = scalar_lea.sflag [#allocation4], %s557_s4 }
  0xff   : > { %1144 = dma.done.wait (%p875_p2), %s558_s23, 256  }
 0x100   : > { %1146 = vsyncadd (%p875_p2), %s558_s23, 4294967040  ;;  %s1483_s28 = sadd.s32 4294967294, %s1181_s22  }
 0x101   : > { %s567_s13 = sand.u32 1, %s1483_s28  }
 0x102   : > { %s568_s6 = scalar_lea.sflag [#allocation9], %s567_s13 }
 0x103   : > { %1148 = dma.done.wait (%p875_p2), %s568_s6, 512  }
 0x104   : > { %1150 = vsyncadd (%p875_p2), %s568_s6, 4294966784  ;;  %s25_s22 = sadd.s32 1, %s1181_s22   ;;  %s1484_s11 = sld [smem:[#allocation17_spill]] }
 0x105   : > { %p22_p3 = scmp.ge.s32.totalorder %s25_s22, 14   ;;  %s1485_s24 = sld [smem:[#allocation18_spill]] }
 0x106   : > { %s1486_s15 = smov %s1157_s16  ;;  %s1487_s16 = smov %s1161_s17 }
 0x107   : > { %s1488_s17 = smov %s1319_s1  ;;  %s1489_s18 = smov %s1173_s20 }
 0x108   : > { %s1490_s19 = smov %s1177_s21  ;;  %24 = sbr.rel (!%p22_p3) target bundleno = 14 (0xe), region = 109 }
 0x10a   : > { %s1491_s20 = smov %s1484_s11 }
 0x10b   : > { %s1492_s21 = smov %s1485_s24 }
 0x10d   :  { %584 = vsyncpa [#allocation3], 1 }
 0x10e   :  { %586 = vsyncpa [#allocation3 + $0x1], 1 }
 0x10f   :  { %587 = vsyncpa [#allocation6], 1 }
 0x110   :  { %588 = vsyncpa [#allocation4], 1 }
 0x111   :  { %590 = vsyncpa [#allocation4 + $0x1], 1 }
 0x112   :  { %591 = vsyncpa [#allocation9], 1 }
 0x113   :  { %593 = vsyncpa [#allocation9 + $0x1], 1 }

</bundles_post_ra>
